<compile_context>
chip_gen: v5e
topology: v5e:2x2
jax: 0.10.0
libtpu: 0.0.40
codegen_flags: <defaults>
</compile_context>

<pallas_src>
import functools

import jax
import jax.numpy as jnp
import numpy as np
from jax.experimental import pallas as pl
from jax.experimental.pallas import tpu as pltpu


def _residual_block_kernel(x_ref, w_ref, b_ref, out_ref, *, H, W):
    """One grid step handles one image of the batch, channels-first.

    x_ref   : (1, C, H*W)    input image, H*W on the lane axis
    w_ref   : (2, 9*G, C)    conv1/conv2 weights (BN scale pre-folded), 9 taps
                             stacked along M, each tap 8-row aligned, G=ceil8(C)
    b_ref   : (2, C, 1)      folded BN biases [b1, b2]
    out_ref : (1, C, H*W)
    """
    C = x_ref.shape[1]
    HW = x_ref.shape[2]
    G = w_ref.shape[1] // 9

    x = x_ref[0]  # (C, HW), f32

    # ---- per-output-position validity masks for the 9 taps (built once, ----
    # ---- reused by both convs; boundary == PyTorch zero padding)        ----
    pos = jax.lax.broadcasted_iota(jnp.int32, (C, HW), 1)   # flat h*W + w
    col = pos % W                                           # w coordinate
    taps = [(dh, dw) for dh in (-1, 0, 1) for dw in (-1, 0, 1)]
    masks = []
    for dh, dw in taps:
        conds = []
        if dh < 0:
            conds.append(pos >= W)                # h + dh >= 0
        if dh > 0:
            conds.append(pos < (H - 1) * W)       # h + dh <  H
        if dw < 0:
            conds.append(col >= 1)                # w + dw >= 0
        if dw > 0:
            conds.append(col < W - 1)             # w + dw <  W
        m = None
        for c in conds:
            m = c if m is None else jnp.logical_and(m, c)
        masks.append(m)                           # center tap -> None

    def conv3x3(v, w, init):
        # Single MXU push for all 9 taps: (9*G, C) @ (C, HW) -> (9*G, HW).
        z = jnp.dot(w, v, preferred_element_type=jnp.float32)
        acc = init
        for t, (dh, dw) in enumerate(taps):
            zd = z[t * G:t * G + C, :]            # 8-aligned sublane slice
            off = dh * W + dw                     # input offset for this tap
            if off != 0:
                # shifted[p] = zd[(p + off) mod HW]  (jnp.roll semantics)
                zd = pltpu.roll(zd, (-off) % HW, axis=1)
            if masks[t] is not None:
                zd = jnp.where(masks[t], zd, 0.0)
            acc = acc + zd
        return acc

    # ---- conv1 (BN1 scale folded into weights) -> +bias1 -> ReLU ----
    init1 = jnp.broadcast_to(b_ref[0], (C, HW))
    y1 = jnp.maximum(conv3x3(x, w_ref[0], init1), 0.0)

    # ---- conv2 (BN2 scale folded) -> +bias2 -> residual add ----
    init2 = x + jnp.broadcast_to(b_ref[1], (C, HW))
    out_ref[0] = conv3x3(y1, w_ref[1], init2)


def residual_block(x_nchw, w1_oihw, w2_oihw, g1, be1, m1, v1, g2, be2, m2, v2,
                   eps=1e-5):
    """x_nchw: (N, C, H, W) float32, conv weights in PyTorch OIHW layout."""
    N, C, H, W = x_nchw.shape
    HW = H * W
    G = ((C + 7) // 8) * 8   # 8-sublane-aligned group per tap

    # Free (bitcast) reshape: NCHW is already channels-first.
    x = x_nchw.reshape(N, C, HW).astype(jnp.float32)

    # Fold eval-mode BatchNorm: scale into conv weights, keep per-channel bias.
    s1 = g1 / jnp.sqrt(v1 + eps)
    b1 = be1 - m1 * s1
    s2 = g2 / jnp.sqrt(v2 + eps)
    b2 = be2 - m2 * s2

    def fold_and_pack(w_oihw, scale):
        # Scale out-channels, OIHW -> (tap, Cout, Cin), tap = kh*3 + kw; pad
        # each tap's Cout to G rows, stack along M.
        w = w_oihw.astype(jnp.float32) * scale.reshape(C, 1, 1, 1)
        wt = jnp.transpose(w, (2, 3, 0, 1)).reshape(9, C, C)
        wt = jnp.pad(wt, ((0, 0), (0, G - C), (0, 0)))
        return wt.reshape(9 * G, C)

    w = jnp.stack([fold_and_pack(w1_oihw, s1), fold_and_pack(w2_oihw, s2)])
    b = jnp.stack([b1, b2]).astype(jnp.float32).reshape(2, C, 1)

    kernel = functools.partial(_residual_block_kernel, H=H, W=W)

    out = pl.pallas_call(
        kernel,
        out_shape=jax.ShapeDtypeStruct((N, C, HW), jnp.float32),
        grid_spec=pltpu.PrefetchScalarGridSpec(
            num_scalar_prefetch=0,
            grid=(N,),
            in_specs=[
                pl.BlockSpec((1, C, HW), lambda n: (n, 0, 0)),
                pl.BlockSpec((2, 9 * G, C), lambda n: (0, 0, 0)),
                pl.BlockSpec((2, C, 1), lambda n: (0, 0, 0)),
            ],
            out_specs=pl.BlockSpec((1, C, HW), lambda n: (n, 0, 0)),
        ),
        compiler_params=pltpu.CompilerParams(
            dimension_semantics=("parallel",),
            vmem_limit_bytes=32 * 1024 * 1024),
    )(x, w, b)

    # Free (bitcast) reshape back to PyTorch NCHW.
    return out.reshape(N, C, H, W)


def _reference(x_nchw, w1, w2, g1, be1, m1, v1, g2, be2, m2, v2, eps=1e-5):
    """Pure-JAX reference (lax conv, eval-mode BN) for correctness check."""
    def conv(x, w):
        return jax.lax.conv_general_dilated(
            x, w, window_strides=(1, 1), padding=((1, 1), (1, 1)),
            dimension_numbers=("NCHW", "OIHW", "NCHW"))

    def bn(x, g, b, m, v):
        g = g.reshape(1, -1, 1, 1); b = b.reshape(1, -1, 1, 1)
        m = m.reshape(1, -1, 1, 1); v = v.reshape(1, -1, 1, 1)
        return (x - m) / jnp.sqrt(v + eps) * g + b

    y = conv(x_nchw, w1)
    y = jnp.maximum(bn(y, g1, be1, m1, v1), 0.0)
    y = conv(y, w2)
    y = bn(y, g2, be2, m2, v2)
    return x_nchw + y


if __name__ == "__main__":
    key = jax.random.PRNGKey(0)
    N, C, H, W = 2, 4, 16, 16  # ndim = 4

    keys = jax.random.split(key, 9)
    x = jax.random.normal(keys[0], (N, C, H, W), jnp.float32)
    w1 = jax.random.normal(keys[1], (C, C, 3, 3), jnp.float32) * 0.1
    w2 = jax.random.normal(keys[2], (C, C, 3, 3), jnp.float32) * 0.1
    g1 = 1.0 + 0.1 * jax.random.normal(keys[3], (C,), jnp.float32)
    be1 = 0.1 * jax.random.normal(keys[4], (C,), jnp.float32)
    g2 = 1.0 + 0.1 * jax.random.normal(keys[5], (C,), jnp.float32)
    be2 = 0.1 * jax.random.normal(keys[6], (C,), jnp.float32)
    m1 = 0.05 * jax.random.normal(keys[7], (C,), jnp.float32)
    v1 = 1.0 + 0.1 * jnp.abs(jax.random.normal(keys[8], (C,), jnp.float32))
    m2 = jnp.zeros((C,), jnp.float32)
    v2 = jnp.ones((C,), jnp.float32)

    out = residual_block(x, w1, w2, g1, be1, m1, v1, g2, be2, m2, v2)
    out = jax.block_until_ready(out)

    ref = _reference(x, w1, w2, g1, be1, m1, v1, g2, be2, m2, v2)
    np.testing.assert_allclose(np.asarray(out), np.asarray(ref),
                               rtol=1e-4, atol=1e-4)
    print("KERNEL_OK")
</pallas_src>

<mosaic_0001>
module attributes {stable_mosaic.version = 11 : i64} {
  func.func @_residual_block_kernel(%arg0: i32, %arg1: memref<1x4x256xf32, #tpu.memory_space<vmem>>, %arg2: memref<2x72x4xf32, #tpu.memory_space<vmem>>, %arg3: memref<2x4x1xf32, #tpu.memory_space<vmem>>, %arg4: memref<1x4x256xf32, #tpu.memory_space<vmem>>) attributes {dimension_semantics = [#tpu.dimension_semantics<parallel>], iteration_bounds = array<i64: 2>, scalar_prefetch = 0 : i64, scratch_operands = 0 : i64, tpu.core_type = #tpu.core_type<tc>, window_params = [{transform_indices = @transform_0, window_bounds = array<i64: 1, 4, 256>}, {pipeline_mode = #tpu.pipeline_mode<synchronous>, transform_indices = @transform_1, window_bounds = array<i64: 2, 72, 4>}, {pipeline_mode = #tpu.pipeline_mode<synchronous>, transform_indices = @transform_2, window_bounds = array<i64: 2, 4, 1>}, {transform_indices = @transform_3, window_bounds = array<i64: 1, 4, 256>}]} {
    %c0 = arith.constant 0 : index
    %c0_0 = arith.constant 0 : index
    %c0_1 = arith.constant 0 : index
    %0 = vector.load %arg1[%c0, %c0_0, %c0_1] : memref<1x4x256xf32, #tpu.memory_space<vmem>>, vector<1x4x256xf32>
    %1 = vector.shape_cast %0 : vector<1x4x256xf32> to vector<4x256xf32>
    %2 = tpu.iota {dimensions = array<i32: 1>} : vector<4x256xi32>
    %c16_i32 = arith.constant 16 : i32
    %c0_i32 = arith.constant 0 : i32
    %3 = arith.cmpi eq, %c16_i32, %c0_i32 : i32
    %c1_i32 = arith.constant 1 : i32
    %4 = arith.select %3, %c1_i32, %c16_i32 : i32
    %5 = vector.broadcast %4 : i32 to vector<4x256xi32>
    %6 = arith.remsi %2, %5 : vector<4x256xi32>
    %c0_i32_2 = arith.constant 0 : i32
    %7 = vector.broadcast %c0_i32_2 : i32 to vector<4x256xi32>
    %8 = arith.cmpi ne, %6, %7 : vector<4x256xi32>
    %c0_i32_3 = arith.constant 0 : i32
    %9 = vector.broadcast %c0_i32_3 : i32 to vector<4x256xi32>
    %10 = arith.cmpi slt, %6, %9 : vector<4x256xi32>
    %c0_i32_4 = arith.constant 0 : i32
    %11 = arith.cmpi slt, %4, %c0_i32_4 : i32
    %12 = vector.broadcast %11 : i1 to vector<4x256xi1>
    %13 = vector.broadcast %12 : vector<4x256xi1> to vector<4x256xi1>
    %14 = arith.xori %10, %13 : vector<4x256xi1>
    %15 = arith.andi %14, %8 : vector<4x256xi1>
    %16 = vector.broadcast %4 : i32 to vector<4x256xi32>
    %17 = arith.addi %6, %16 : vector<4x256xi32>
    %18 = arith.select %15, %17, %6 : vector<4x256xi1>, vector<4x256xi32>
    %c16_i32_5 = arith.constant 16 : i32
    %19 = vector.broadcast %c16_i32_5 : i32 to vector<4x256xi32>
    %20 = arith.cmpi sge, %2, %19 : vector<4x256xi32>
    %c1_i32_6 = arith.constant 1 : i32
    %21 = vector.broadcast %c1_i32_6 : i32 to vector<4x256xi32>
    %22 = arith.cmpi sge, %18, %21 : vector<4x256xi32>
    %23 = arith.andi %20, %22 : vector<4x256xi1>
    %c16_i32_7 = arith.constant 16 : i32
    %24 = vector.broadcast %c16_i32_7 : i32 to vector<4x256xi32>
    %25 = arith.cmpi sge, %2, %24 : vector<4x256xi32>
    %c16_i32_8 = arith.constant 16 : i32
    %26 = vector.broadcast %c16_i32_8 : i32 to vector<4x256xi32>
    %27 = arith.cmpi sge, %2, %26 : vector<4x256xi32>
    %c15_i32 = arith.constant 15 : i32
    %28 = vector.broadcast %c15_i32 : i32 to vector<4x256xi32>
    %29 = arith.cmpi slt, %18, %28 : vector<4x256xi32>
    %30 = arith.andi %27, %29 : vector<4x256xi1>
    %c1_i32_9 = arith.constant 1 : i32
    %31 = vector.broadcast %c1_i32_9 : i32 to vector<4x256xi32>
    %32 = arith.cmpi sge, %18, %31 : vector<4x256xi32>
    %c15_i32_10 = arith.constant 15 : i32
    %33 = vector.broadcast %c15_i32_10 : i32 to vector<4x256xi32>
    %34 = arith.cmpi slt, %18, %33 : vector<4x256xi32>
    %c240_i32 = arith.constant 240 : i32
    %35 = vector.broadcast %c240_i32 : i32 to vector<4x256xi32>
    %36 = arith.cmpi slt, %2, %35 : vector<4x256xi32>
    %c1_i32_11 = arith.constant 1 : i32
    %37 = vector.broadcast %c1_i32_11 : i32 to vector<4x256xi32>
    %38 = arith.cmpi sge, %18, %37 : vector<4x256xi32>
    %39 = arith.andi %36, %38 : vector<4x256xi1>
    %c240_i32_12 = arith.constant 240 : i32
    %40 = vector.broadcast %c240_i32_12 : i32 to vector<4x256xi32>
    %41 = arith.cmpi slt, %2, %40 : vector<4x256xi32>
    %c240_i32_13 = arith.constant 240 : i32
    %42 = vector.broadcast %c240_i32_13 : i32 to vector<4x256xi32>
    %43 = arith.cmpi slt, %2, %42 : vector<4x256xi32>
    %c15_i32_14 = arith.constant 15 : i32
    %44 = vector.broadcast %c15_i32_14 : i32 to vector<4x256xi32>
    %45 = arith.cmpi slt, %18, %44 : vector<4x256xi32>
    %46 = arith.andi %43, %45 : vector<4x256xi1>
    %c0_15 = arith.constant 0 : index
    %c0_16 = arith.constant 0 : index
    %c0_17 = arith.constant 0 : index
    %47 = vector.load %arg3[%c0_15, %c0_16, %c0_17] : memref<2x4x1xf32, #tpu.memory_space<vmem>>, vector<1x4x1xf32>
    %48 = vector.shape_cast %47 : vector<1x4x1xf32> to vector<4x1xf32>
    %49 = vector.shape_cast %48 : vector<4x1xf32> to vector<4x1xf32>
    %50 = vector.broadcast %49 : vector<4x1xf32> to vector<4x256xf32>
    %c0_18 = arith.constant 0 : index
    %c0_19 = arith.constant 0 : index
    %c0_20 = arith.constant 0 : index
    %51 = vector.load %arg2[%c0_18, %c0_19, %c0_20] : memref<2x72x4xf32, #tpu.memory_space<vmem>>, vector<1x72x4xf32>
    %52 = vector.shape_cast %51 : vector<1x72x4xf32> to vector<72x4xf32>
    %cst = arith.constant dense<0.000000e+00> : vector<72x256xf32>
    %53 = tpu.matmul %52, %1, %cst {dimension_numbers = #tpu.dot_dimension_numbers<[1], [0], [0], [1], [0, 0, 1, 1], [], []>} : vector<72x4xf32>, vector<4x256xf32>, vector<72x256xf32> -> vector<72x256xf32>
    %54 = vector.extract_strided_slice %53 {offsets = [0, 0], sizes = [4, 256], strides = [1, 1]} : vector<72x256xf32> to vector<4x256xf32>
    %c17_i32 = arith.constant 17 : i32
    %55 = tpu.dynamic_rotate %54 by %c17_i32 dim 1 : vector<4x256xf32>, i32 -> vector<4x256xf32>
    %cst_21 = arith.constant 0.000000e+00 : f32
    %56 = vector.broadcast %cst_21 : f32 to vector<4x256xf32>
    %57 = arith.select %23, %55, %56 : vector<4x256xi1>, vector<4x256xf32>
    %58 = arith.addf %50, %57 : vector<4x256xf32>
    %59 = vector.extract_strided_slice %53 {offsets = [8, 0], sizes = [4, 256], strides = [1, 1]} : vector<72x256xf32> to vector<4x256xf32>
    %c16_i32_22 = arith.constant 16 : i32
    %60 = tpu.dynamic_rotate %59 by %c16_i32_22 dim 1 : vector<4x256xf32>, i32 -> vector<4x256xf32>
    %cst_23 = arith.constant 0.000000e+00 : f32
    %61 = vector.broadcast %cst_23 : f32 to vector<4x256xf32>
    %62 = arith.select %25, %60, %61 : vector<4x256xi1>, vector<4x256xf32>
    %63 = arith.addf %58, %62 : vector<4x256xf32>
    %64 = vector.extract_strided_slice %53 {offsets = [16, 0], sizes = [4, 256], strides = [1, 1]} : vector<72x256xf32> to vector<4x256xf32>
    %c15_i32_24 = arith.constant 15 : i32
    %65 = tpu.dynamic_rotate %64 by %c15_i32_24 dim 1 : vector<4x256xf32>, i32 -> vector<4x256xf32>
    %cst_25 = arith.constant 0.000000e+00 : f32
    %66 = vector.broadcast %cst_25 : f32 to vector<4x256xf32>
    %67 = arith.select %30, %65, %66 : vector<4x256xi1>, vector<4x256xf32>
    %68 = arith.addf %63, %67 : vector<4x256xf32>
    %69 = vector.extract_strided_slice %53 {offsets = [24, 0], sizes = [4, 256], strides = [1, 1]} : vector<72x256xf32> to vector<4x256xf32>
    %c1_i32_26 = arith.constant 1 : i32
    %70 = tpu.dynamic_rotate %69 by %c1_i32_26 dim 1 : vector<4x256xf32>, i32 -> vector<4x256xf32>
    %cst_27 = arith.constant 0.000000e+00 : f32
    %71 = vector.broadcast %cst_27 : f32 to vector<4x256xf32>
    %72 = arith.select %32, %70, %71 : vector<4x256xi1>, vector<4x256xf32>
    %73 = arith.addf %68, %72 : vector<4x256xf32>
    %74 = vector.extract_strided_slice %53 {offsets = [32, 0], sizes = [4, 256], strides = [1, 1]} : vector<72x256xf32> to vector<4x256xf32>
    %75 = arith.addf %73, %74 : vector<4x256xf32>
    %76 = vector.extract_strided_slice %53 {offsets = [40, 0], sizes = [4, 256], strides = [1, 1]} : vector<72x256xf32> to vector<4x256xf32>
    %c255_i32 = arith.constant 255 : i32
    %77 = tpu.dynamic_rotate %76 by %c255_i32 dim 1 : vector<4x256xf32>, i32 -> vector<4x256xf32>
    %cst_28 = arith.constant 0.000000e+00 : f32
    %78 = vector.broadcast %cst_28 : f32 to vector<4x256xf32>
    %79 = arith.select %34, %77, %78 : vector<4x256xi1>, vector<4x256xf32>
    %80 = arith.addf %75, %79 : vector<4x256xf32>
    %81 = vector.extract_strided_slice %53 {offsets = [48, 0], sizes = [4, 256], strides = [1, 1]} : vector<72x256xf32> to vector<4x256xf32>
    %c241_i32 = arith.constant 241 : i32
    %82 = tpu.dynamic_rotate %81 by %c241_i32 dim 1 : vector<4x256xf32>, i32 -> vector<4x256xf32>
    %cst_29 = arith.constant 0.000000e+00 : f32
    %83 = vector.broadcast %cst_29 : f32 to vector<4x256xf32>
    %84 = arith.select %39, %82, %83 : vector<4x256xi1>, vector<4x256xf32>
    %85 = arith.addf %80, %84 : vector<4x256xf32>
    %86 = vector.extract_strided_slice %53 {offsets = [56, 0], sizes = [4, 256], strides = [1, 1]} : vector<72x256xf32> to vector<4x256xf32>
    %c240_i32_30 = arith.constant 240 : i32
    %87 = tpu.dynamic_rotate %86 by %c240_i32_30 dim 1 : vector<4x256xf32>, i32 -> vector<4x256xf32>
    %cst_31 = arith.constant 0.000000e+00 : f32
    %88 = vector.broadcast %cst_31 : f32 to vector<4x256xf32>
    %89 = arith.select %41, %87, %88 : vector<4x256xi1>, vector<4x256xf32>
    %90 = arith.addf %85, %89 : vector<4x256xf32>
    %91 = vector.extract_strided_slice %53 {offsets = [64, 0], sizes = [4, 256], strides = [1, 1]} : vector<72x256xf32> to vector<4x256xf32>
    %c239_i32 = arith.constant 239 : i32
    %92 = tpu.dynamic_rotate %91 by %c239_i32 dim 1 : vector<4x256xf32>, i32 -> vector<4x256xf32>
    %cst_32 = arith.constant 0.000000e+00 : f32
    %93 = vector.broadcast %cst_32 : f32 to vector<4x256xf32>
    %94 = arith.select %46, %92, %93 : vector<4x256xi1>, vector<4x256xf32>
    %95 = arith.addf %90, %94 : vector<4x256xf32>
    %cst_33 = arith.constant 0.000000e+00 : f32
    %96 = vector.broadcast %cst_33 : f32 to vector<4x256xf32>
    %97 = arith.maximumf %95, %96 : vector<4x256xf32>
    %c1 = arith.constant 1 : index
    %c0_34 = arith.constant 0 : index
    %c0_35 = arith.constant 0 : index
    %98 = vector.load %arg3[%c1, %c0_34, %c0_35] : memref<2x4x1xf32, #tpu.memory_space<vmem>>, vector<1x4x1xf32>
    %99 = vector.shape_cast %98 : vector<1x4x1xf32> to vector<4x1xf32>
    %100 = vector.shape_cast %99 : vector<4x1xf32> to vector<4x1xf32>
    %101 = vector.broadcast %100 : vector<4x1xf32> to vector<4x256xf32>
    %102 = arith.addf %1, %101 : vector<4x256xf32>
    %c1_36 = arith.constant 1 : index
    %c0_37 = arith.constant 0 : index
    %c0_38 = arith.constant 0 : index
    %103 = vector.load %arg2[%c1_36, %c0_37, %c0_38] : memref<2x72x4xf32, #tpu.memory_space<vmem>>, vector<1x72x4xf32>
    %104 = vector.shape_cast %103 : vector<1x72x4xf32> to vector<72x4xf32>
    %cst_39 = arith.constant dense<0.000000e+00> : vector<72x256xf32>
    %105 = tpu.matmul %104, %97, %cst_39 {dimension_numbers = #tpu.dot_dimension_numbers<[1], [0], [0], [1], [0, 0, 1, 1], [], []>} : vector<72x4xf32>, vector<4x256xf32>, vector<72x256xf32> -> vector<72x256xf32>
    %106 = vector.extract_strided_slice %105 {offsets = [0, 0], sizes = [4, 256], strides = [1, 1]} : vector<72x256xf32> to vector<4x256xf32>
    %c17_i32_40 = arith.constant 17 : i32
    %107 = tpu.dynamic_rotate %106 by %c17_i32_40 dim 1 : vector<4x256xf32>, i32 -> vector<4x256xf32>
    %cst_41 = arith.constant 0.000000e+00 : f32
    %108 = vector.broadcast %cst_41 : f32 to vector<4x256xf32>
    %109 = arith.select %23, %107, %108 : vector<4x256xi1>, vector<4x256xf32>
    %110 = arith.addf %102, %109 : vector<4x256xf32>
    %111 = vector.extract_strided_slice %105 {offsets = [8, 0], sizes = [4, 256], strides = [1, 1]} : vector<72x256xf32> to vector<4x256xf32>
    %c16_i32_42 = arith.constant 16 : i32
    %112 = tpu.dynamic_rotate %111 by %c16_i32_42 dim 1 : vector<4x256xf32>, i32 -> vector<4x256xf32>
    %cst_43 = arith.constant 0.000000e+00 : f32
    %113 = vector.broadcast %cst_43 : f32 to vector<4x256xf32>
    %114 = arith.select %25, %112, %113 : vector<4x256xi1>, vector<4x256xf32>
    %115 = arith.addf %110, %114 : vector<4x256xf32>
    %116 = vector.extract_strided_slice %105 {offsets = [16, 0], sizes = [4, 256], strides = [1, 1]} : vector<72x256xf32> to vector<4x256xf32>
    %c15_i32_44 = arith.constant 15 : i32
    %117 = tpu.dynamic_rotate %116 by %c15_i32_44 dim 1 : vector<4x256xf32>, i32 -> vector<4x256xf32>
    %cst_45 = arith.constant 0.000000e+00 : f32
    %118 = vector.broadcast %cst_45 : f32 to vector<4x256xf32>
    %119 = arith.select %30, %117, %118 : vector<4x256xi1>, vector<4x256xf32>
    %120 = arith.addf %115, %119 : vector<4x256xf32>
    %121 = vector.extract_strided_slice %105 {offsets = [24, 0], sizes = [4, 256], strides = [1, 1]} : vector<72x256xf32> to vector<4x256xf32>
    %c1_i32_46 = arith.constant 1 : i32
    %122 = tpu.dynamic_rotate %121 by %c1_i32_46 dim 1 : vector<4x256xf32>, i32 -> vector<4x256xf32>
    %cst_47 = arith.constant 0.000000e+00 : f32
    %123 = vector.broadcast %cst_47 : f32 to vector<4x256xf32>
    %124 = arith.select %32, %122, %123 : vector<4x256xi1>, vector<4x256xf32>
    %125 = arith.addf %120, %124 : vector<4x256xf32>
    %126 = vector.extract_strided_slice %105 {offsets = [32, 0], sizes = [4, 256], strides = [1, 1]} : vector<72x256xf32> to vector<4x256xf32>
    %127 = arith.addf %125, %126 : vector<4x256xf32>
    %128 = vector.extract_strided_slice %105 {offsets = [40, 0], sizes = [4, 256], strides = [1, 1]} : vector<72x256xf32> to vector<4x256xf32>
    %c255_i32_48 = arith.constant 255 : i32
    %129 = tpu.dynamic_rotate %128 by %c255_i32_48 dim 1 : vector<4x256xf32>, i32 -> vector<4x256xf32>
    %cst_49 = arith.constant 0.000000e+00 : f32
    %130 = vector.broadcast %cst_49 : f32 to vector<4x256xf32>
    %131 = arith.select %34, %129, %130 : vector<4x256xi1>, vector<4x256xf32>
    %132 = arith.addf %127, %131 : vector<4x256xf32>
    %133 = vector.extract_strided_slice %105 {offsets = [48, 0], sizes = [4, 256], strides = [1, 1]} : vector<72x256xf32> to vector<4x256xf32>
    %c241_i32_50 = arith.constant 241 : i32
    %134 = tpu.dynamic_rotate %133 by %c241_i32_50 dim 1 : vector<4x256xf32>, i32 -> vector<4x256xf32>
    %cst_51 = arith.constant 0.000000e+00 : f32
    %135 = vector.broadcast %cst_51 : f32 to vector<4x256xf32>
    %136 = arith.select %39, %134, %135 : vector<4x256xi1>, vector<4x256xf32>
    %137 = arith.addf %132, %136 : vector<4x256xf32>
    %138 = vector.extract_strided_slice %105 {offsets = [56, 0], sizes = [4, 256], strides = [1, 1]} : vector<72x256xf32> to vector<4x256xf32>
    %c240_i32_52 = arith.constant 240 : i32
    %139 = tpu.dynamic_rotate %138 by %c240_i32_52 dim 1 : vector<4x256xf32>, i32 -> vector<4x256xf32>
    %cst_53 = arith.constant 0.000000e+00 : f32
    %140 = vector.broadcast %cst_53 : f32 to vector<4x256xf32>
    %141 = arith.select %41, %139, %140 : vector<4x256xi1>, vector<4x256xf32>
    %142 = arith.addf %137, %141 : vector<4x256xf32>
    %143 = vector.extract_strided_slice %105 {offsets = [64, 0], sizes = [4, 256], strides = [1, 1]} : vector<72x256xf32> to vector<4x256xf32>
    %c239_i32_54 = arith.constant 239 : i32
    %144 = tpu.dynamic_rotate %143 by %c239_i32_54 dim 1 : vector<4x256xf32>, i32 -> vector<4x256xf32>
    %cst_55 = arith.constant 0.000000e+00 : f32
    %145 = vector.broadcast %cst_55 : f32 to vector<4x256xf32>
    %146 = arith.select %46, %144, %145 : vector<4x256xi1>, vector<4x256xf32>
    %147 = arith.addf %142, %146 : vector<4x256xf32>
    %c0_56 = arith.constant 0 : index
    %c0_57 = arith.constant 0 : index
    %c0_58 = arith.constant 0 : index
    %148 = vector.load %arg4[%c0_56, %c0_57, %c0_58] : memref<1x4x256xf32, #tpu.memory_space<vmem>>, vector<1x4x256xf32>
    %149 = vector.shape_cast %148 : vector<1x4x256xf32> to vector<4x256xf32>
    %150 = vector.shape_cast %147 : vector<4x256xf32> to vector<1x4x256xf32>
    tpu.vector_store %arg4[%c0_56, %c0_57, %c0_58], %150 {strides = array<i32>} : memref<1x4x256xf32, #tpu.memory_space<vmem>>, vector<1x4x256xf32>,
    return
  }
  func.func @transform_0(%arg0: i32) -> (i32, i32, i32) {
    %c0_i32 = arith.constant 0 : i32
    %c0_i32_0 = arith.constant 0 : i32
    %c0_i32_1 = arith.constant 0 : i32
    return %arg0, %c0_i32, %c0_i32_0 : i32, i32, i32
  }
  func.func @transform_1(%arg0: i32) -> (i32, i32, i32) {
    %c0_i32 = arith.constant 0 : i32
    %c0_i32_0 = arith.constant 0 : i32
    %c0_i32_1 = arith.constant 0 : i32
    %c0_i32_2 = arith.constant 0 : i32
    return %c0_i32, %c0_i32_0, %c0_i32_1 : i32, i32, i32
  }
  func.func @transform_2(%arg0: i32) -> (i32, i32, i32) {
    %c0_i32 = arith.constant 0 : i32
    %c0_i32_0 = arith.constant 0 : i32
    %c0_i32_1 = arith.constant 0 : i32
    %c0_i32_2 = arith.constant 0 : i32
    return %c0_i32, %c0_i32_0, %c0_i32_1 : i32, i32, i32
  }
  func.func @transform_3(%arg0: i32) -> (i32, i32, i32) {
    %c0_i32 = arith.constant 0 : i32
    %c0_i32_0 = arith.constant 0 : i32
    %c0_i32_1 = arith.constant 0 : i32
    return %arg0, %c0_i32, %c0_i32_0 : i32, i32, i32
  }
}

</mosaic_0001>

<bundles_post_ra>
// kernel: tpu_custom_call.1
= control target key start
LH: loop header
LB: loop body
LE: loop exit
PB: predicated region body
PF: predicated region fallthrough
CT: control target
= control target key end

     0   :  { %8 = vsyncpa [#allocation3], 0  ;;  %s1420_s0 = inlined_call_operand.vmem [shape: f32[2,4,256], index: 0, kind: input, shape index: {}]   ;;  %s1421_s1 = inlined_call_operand.vmem [shape: f32[2,72,4], index: 1, kind: input, shape index: {}]   ;;  %s1422_s2 = inlined_call_operand.vmem [shape: f32[2,4,1], index: 2, kind: input, shape index: {}]   ;;  %s1423_s3 = inlined_call_operand.hbm [shape: f32[2,4,256], index: 3, kind: output, shape index: {}]  }
   0x1   :  { %10 = vsyncpa [#allocation3 + $0x1], 0  ;;  %s992_s12 = smov 0   ;;  %s994_s13 = smov 0  }
   0x2   :  { %s996_s14 = smov 0   ;;  %s998_s15 = smov 0  }
   0x3 LB: > { %s1013_s16 = sadd.s32 4294967295, %s960_s15   ;;  %s783_s17 = sadd.s32 4294967294, %s960_s15   ;;  %s960_s15 = sphi %s998_s15, %s1459_s15   ;;  %s956_s14 = sphi %s996_s14, %s1458_s14   ;;  %s952_s13 = sphi %s994_s13, %s1457_s13   ;;  %s948_s12 = sphi %s992_s12, %s1456_s12  }
   0x4   : > { %s1017_s18 = sadd.s32 1, %s960_s15   ;;  %s91_s19 = sadd.s32 1, %s956_s14 }
   0x5   : > { %s88_s20 = ssub.s32 %s960_s15, %s1017_s18  ;;  %p101_p0 = scmp.ne.s32.totalorder %s956_s14, %s952_s13 }
   0x6   : > { %p89_p1 = scmp.eq.s32.totalorder %s88_s20, 0  ;;  %p102_p2 = scmp.eq.s32.totalorder %s1013_s16, 1 }
   0x7   : > { %p107_p3 = scmp.ne.s32.totalorder %s952_s13, %s948_s12  ;;  %p108_p4 = scmp.eq.s32.totalorder %s783_s17, 1 }
   0x8   : > { %s1028_s21 = scalar_select %p89_p1, %s956_s14, %s91_s19  }
   0x9   : > { %p1030_p5 = por %p102_p2, %p101_p0  ;;  %p1034_p6 = por %p108_p4, %p107_p3 }
   0xa   : > { %p786_p7 = scmp.ge.s32.totalorder %s960_s15, 1  ;;  %p140_p8 = scmp.lt.s32.totalorder %s960_s15, 3 }
   0xc   : > { %p141_p9 = pnand %p786_p7, %p140_p8 }
   0xd   : > { %p164_p10 = scmp.lt.s32.totalorder (!%p141_p9), %s1013_s16, 1  ;;  %s963_s4 = smov (!%p141_p9), 17  }
   0xe   : > { %144 = sbr.rel (%p141_p9) target bundleno = 666 (0x29a), region = 32  ;;  %s964_s5 = smov (!%p141_p9), 16  }
   0xf   : > { %s965_s6 = smov (!%p141_p9), 15   ;;  %s966_s7 = smov (!%p141_p9), 1  }
  0x10   : > { %s967_s8 = smov (!%p141_p9), 127   ;;  %s968_s9 = smov (!%p141_p9), 113  }
  0x11   : > { %s969_s10 = smov (!%p141_p9), 112   ;;  %s970_s11 = smov (!%p141_p9), 111  }
  0x12   : > { %s918_s26 = scalar_lea.hbm (!%p141_p9), %s1423_s3, 16 }
  0x13   : > { %s165_s24 = scalar_select %p164_p10, %s1013_s16, 1  ;;  %vm260_vm0 = vcmask 1043456   ;;  %v219_v1 = vld [vmem:[%s1421_s1] sm:$0xff]  ;;  %vm232_vm1 = vcmask 31744   ;;  %v220_v4 = vld [vmem:[%s1421_s1 + $0x8] sm:$0xff]  ;;  %v221_v5 = vld [vmem:[%s1421_s1 + $0x10] sm:$0xff]  ;;  %v170_v36 = vlaneseq }
  0x14   : > { %v222_v6 = vld [vmem:[%s1421_s1 + $0x18] sm:$0xff]  ;;  %v223_v7 = vld [vmem:[%s1421_s1 + $0x20] sm:$0xff]  ;;  %v962_v8 = vmov 0   ;;  %v224_v9 = vld [vmem:[%s1421_s1 + $0x28] sm:$0xff] }
  0x15   : > { %s845_s25 = sshll.u32 %s165_s24, 3  ;;  %896 = vset.pattern.permute.xlu1 %v962_v8  ;;  %897 = vset.pattern.permute.xlu0 %v962_v8  ;;  %v225_v10 = vld [vmem:[%s1421_s1 + $0x30] sm:$0xff]  ;;  %v226_v11 = vld [vmem:[%s1421_s1 + $0x38] sm:$0xff]  ;;  %v227_v12 = vld [vmem:[%s1421_s1 + $0x40] sm:$0xff]  ;;  %v1121_v38 = vand.u32 127, %v170_v36 }
  0x16   : > { %s168_s28 = scalar_lea.vmem %s1420_s0, %s845_s25  ;;  %v213_v13 = vld [vmem:[%s1422_s2] sm:$0xf]  ;;  %v810_v32 = vld [vmem:[%s1422_s2 + $0x4] sm:$0xf] }
  0x17   : > { %v1045_v0 = vld [vmem:[%s168_s28] sm:$0xff]  ;;  %216 = vperm.xlu1 %896, %v213_v13   ;;  %v1124_v41 = vadd.s32 128, %v1121_v38  ;;  %v177_v42 = vand.u32 15, %v1121_v38  ;;  %vm1424_vm2 = vcmp.ge.s32.totalorder %v1121_v38, 16  ;;  %vm357_vm4 = vcmp.lt.s32.totalorder %v1121_v38, 17 }
  0x18   : > { %229 = vst [vmem:[#allocation1] ss:$2 sm:$0xff] %v1045_v0  ;;  %vm368_vm7 = vcmp.lt.s32.totalorder %v1121_v38, 16  ;;  %vm379_vm9 = vcmp.lt.s32.totalorder %v1121_v38, 15  ;;  %vm1425_vm11 = vcmp.lt.s32.totalorder %v1121_v38, 1  ;;  %vm1427_vm13 = vcmp.lt.s32.totalorder %v1121_v38, 127 }
  0x19   : > { %v184_v44 = vand.u32 15, %v1124_v41  ;;  %vm1129_vm3 = vcmp.ge.s32.totalorder %v177_v42, 1  ;;  %vm1155_vm8 = vcmp.lt.s32.totalorder %v177_v42, 15  ;;  %vm208_vm14 = vcmp.lt.s32.totalorder %v1124_v41, 240 }
  0x1a   : > { %vm1142_vm6 = vmand %vm1424_vm2, %vm1129_vm3  ;;  %vm1426_vm15 = vcmp.lt.s32.totalorder %v1121_v38, 113 }
  0x1b   : > { %vm1134_vm5 = vcmp.ge.s32.totalorder %v184_v44, 1  ;;  %vm1162_vm10 = vcmp.lt.s32.totalorder %v184_v44, 15  ;;  %vm1171_vm12 = vmand %vm1424_vm2, %vm1155_vm8 }
  0x1f   : > { %v230_v2 = vld.sshfl [vmem:[#allocation1] sm:$0xff pattern:$0x75316420]  ;;  %v231_v3 = vld.sshfl [vmem:[#allocation1 + $0x8] sm:$0xff pattern:$0x75316420] }
  0x20   : > { %790 = vmatpush.msk.msra.mxu0 %vm260_vm0, %v230_v2  ;;  %800 = vmatpush.msk.msra.mxu1 %vm260_vm0, %v231_v3 }
  0x21   : > { %791 = vmatmul.msk.f32.vlgmr.msra.gmra.mxu0 %vm232_vm1, %v219_v1  ;;  %801 = vmatmul.msk.f32.vlgmr.msra.gmra.mxu1 %vm232_vm1, %v219_v1 }
  0x29   : > { %792 = vmatmul.msk.f32.gmra.mxu0 %vm232_vm1, %v220_v4  ;;  %802 = vmatmul.msk.f32.gmra.mxu1 %vm232_vm1, %v220_v4 }
  0x31   : > { %793 = vmatmul.msk.f32.gmra.mxu0 %vm232_vm1, %v221_v5  ;;  %803 = vmatmul.msk.f32.gmra.mxu1 %vm232_vm1, %v221_v5 }
  0x39   : > { %794 = vmatmul.msk.f32.gmra.mxu0 %vm232_vm1, %v222_v6  ;;  %804 = vmatmul.msk.f32.gmra.mxu1 %vm232_vm1, %v222_v6 }
  0x41   : > { %795 = vmatmul.msk.f32.gmra.mxu0 %vm232_vm1, %v223_v7  ;;  %805 = vmatmul.msk.f32.gmra.mxu1 %vm232_vm1, %v223_v7 }
  0x49   : > { %796 = vmatmul.msk.f32.gmra.mxu0 %vm232_vm1, %v224_v9  ;;  %806 = vmatmul.msk.f32.gmra.mxu1 %vm232_vm1, %v224_v9 }
  0x51   : > { %797 = vmatmul.msk.f32.gmra.mxu0 %vm232_vm1, %v225_v10  ;;  %807 = vmatmul.msk.f32.gmra.mxu1 %vm232_vm1, %v225_v10 }
  0x59   : > { %798 = vmatmul.msk.f32.gmra.mxu0 %vm232_vm1, %v226_v11  ;;  %808 = vmatmul.msk.f32.gmra.mxu1 %vm232_vm1, %v226_v11 }
  0x61   : > { %799 = vmatmul.msk.f32.gmra.mxu0 %vm232_vm1, %v227_v12  ;;  %809 = vmatmul.msk.f32.gmra.mxu1 %vm232_vm1, %v227_v12 }
  0x89   : > { %v217_v35 = vpop.permute.xlu1 %216 }
  0x9e   : > { %v282_v14 = vpop.f32.mrf.mxu0  ;;  %v326_v15 = vpop.f32.mrf.mxu1 }
  0x9f   : > { %353 = vrot.lane.b32.xlu0 %v282_v14, %s963_s4 }
  0xa6   : > { %v285_v16 = vpop.f32.mrf.mxu0  ;;  %v329_v17 = vpop.f32.mrf.mxu1 }
  0xa7   : > { %366 = vrot.lane.b32.xlu2 %v329_v17, %s964_s5  ;;  %355 = vrot.lane.b32.xlu0 %v326_v15, %s963_s4 }
  0xa8   : > { %364 = vrot.lane.b32.xlu1 %v285_v16, %s964_s5 }
  0xae   : > { %v288_v18 = vpop.f32.mrf.mxu0  ;;  %v332_v19 = vpop.f32.mrf.mxu1 }
  0xaf   : > { %377 = vrot.lane.b32.xlu0 %v332_v19, %s965_s6  ;;  %375 = vrot.lane.b32.xlu2 %v288_v18, %s965_s6 }
  0xb6   : > { %v291_v20 = vpop.f32.mrf.mxu0  ;;  %v335_v21 = vpop.f32.mrf.mxu1 }
  0xb7   : > { %388 = vrot.lane.b32.xlu2 %v335_v21, %s966_s7  ;;  %386 = vrot.lane.b32.xlu1 %v291_v20, %s966_s7 }
  0xbe   : > { %v1106_v22 = vpop.f32.mrf.mxu0  ;;  %v1108_v23 = vpop.f32.mrf.mxu1 }
  0xc6   : > { %v297_v24 = vpop.f32.mrf.mxu0  ;;  %v341_v25 = vpop.f32.mrf.mxu1 }
  0xc7   : > { %401 = vrot.lane.b32.xlu1 %v341_v25, %s967_s8  ;;  %399 = vrot.lane.b32.xlu0 %v297_v24, %s967_s8 }
  0xce   : > { %v300_v26 = vpop.f32.mrf.mxu0  ;;  %v344_v27 = vpop.f32.mrf.mxu1 }
  0xcf   : > { %412 = vrot.lane.b32.xlu0 %v344_v27, %s968_s9  ;;  %410 = vrot.lane.b32.xlu2 %v300_v26, %s968_s9 }
  0xd6   : > { %v303_v28 = vpop.f32.mrf.mxu0  ;;  %v347_v29 = vpop.f32.mrf.mxu1 }
  0xd7   : > { %423 = vrot.lane.b32.xlu2 %v347_v29, %s969_s10  ;;  %421 = vrot.lane.b32.xlu1 %v303_v28, %s969_s10 }
  0xde   : > { %v306_v30 = vpop.f32.mrf.mxu0  ;;  %v350_v31 = vpop.f32.mrf.mxu1 }
  0xdf   : > { %434 = vrot.lane.b32.xlu1 %v350_v31, %s970_s11  ;;  %432 = vrot.lane.b32.xlu0 %v306_v30, %s970_s11 }
  0xe7   : > { %449 = vperm.xlu1 %896, %v810_v32  }
 0x101   : > { %v367_v34 = vpop.permute.xlu2 %366 }
 0x109   : > { %v376_v39 = vpop.permute.xlu2 %375 }
 0x111   : > { %v354_v33 = vpop.permute.xlu0 %353  ;;  %v389_v46 = vpop.permute.xlu2 %388 }
 0x119   : > { %v356_v37 = vpop.permute.xlu0 %355 }
 0x11a   : > { %v365_v40 = vpop.permute.xlu1 %364  ;;  %v358_v50 = vsel %vm357_vm4, %v354_v33, %v356_v37  ;;  %v359_v51 = vsel %vm357_vm4, %v356_v37, %v354_v33 }
 0x11b   : > { %v360_v52 = vsel %vm1142_vm6, %v359_v51, 0.0  ;;  %v361_v53 = vsel %vm1134_vm5, %v358_v50, 0.0  ;;  %v370_v56 = vsel %vm368_vm7, %v367_v34, %v365_v40  ;;  %v369_v4 = vsel %vm368_vm7, %v365_v40, %v367_v34 }
 0x11c   : > { %v362_v58 = vadd.f32 %v360_v52, %v217_v35  ;;  %v363_v59 = vadd.f32 %v361_v53, %v217_v35  ;;  %v371_v5 = vsel %vm1424_vm2, %v370_v56, 0.0  ;;  %vm425_vm2 = vcmp.lt.s32.totalorder %v1121_v38, 112  ;;  %v811_v56 = vld [vmem:[%s1421_s1 + $0x48] sm:$0xff] }
 0x11e   : > { %v373_v8 = vadd.f32 %v371_v5, %v362_v58  ;;  %v374_v9 = vadd.f32 %v369_v4, %v363_v59  ;;  %v812_v58 = vld [vmem:[%s1421_s1 + $0x50] sm:$0xff]  ;;  %v813_v59 = vld [vmem:[%s1421_s1 + $0x58] sm:$0xff] }
 0x121   : > { %v378_v43 = vpop.permute.xlu0 %377 }
 0x122   : > { %v380_v61 = vsel %vm379_vm9, %v376_v39, %v378_v43  ;;  %v381_v62 = vsel %vm379_vm9, %v378_v43, %v376_v39 }
 0x123   : > { %v382_v6 = vsel %vm1171_vm12, %v381_v62, 0.0  ;;  %v383_v7 = vsel %vm1162_vm10, %v380_v61, 0.0  ;;  %v814_v61 = vld [vmem:[%s1421_s1 + $0x60] sm:$0xff]  ;;  %v815_v62 = vld [vmem:[%s1421_s1 + $0x68] sm:$0xff] }
 0x124   : > { %v384_v12 = vadd.f32 %v382_v6, %v373_v8  ;;  %v385_v13 = vadd.f32 %v383_v7, %v374_v9 }
 0x129   : > { %v387_v47 = vpop.permute.xlu1 %386  ;;  %v411_v63 = vpop.permute.xlu2 %410 }
 0x12a   : > { %v391_v2 = vsel %vm1425_vm11, %v387_v47, %v389_v46  ;;  %v392_v3 = vsel %vm1425_vm11, %v389_v46, %v387_v47  ;;  %vm1207_vm11 = vmand %vm208_vm14, %vm1134_vm5 }
 0x12b   : > { %v393_v10 = vsel %vm1129_vm3, %v392_v3, 0.0  ;;  %v394_v11 = vsel %vm1134_vm5, %v391_v2, 0.0  ;;  %v818_v2 = vld [vmem:[%s1421_s1 + $0x80] sm:$0xff]  ;;  %v819_v3 = vld [vmem:[%s1421_s1 + $0x88] sm:$0xff] }
 0x12c   : > { %v395_v15 = vadd.f32 %v393_v10, %v384_v12  ;;  %v396_v16 = vadd.f32 %v394_v11, %v385_v13 }
 0x12e   : > { %v397_v28 = vadd.f32 %v395_v15, %v1106_v22  ;;  %v398_v29 = vadd.f32 %v396_v16, %v1108_v23 }
 0x131   : > { %v424_v25 = vpop.permute.xlu2 %423 }
 0x139   : > { %v400_v55 = vpop.permute.xlu0 %399  ;;  %v402_v1 = vpop.permute.xlu1 %401 }
 0x13a   : > { %v404_v17 = vsel %vm1427_vm13, %v400_v55, %v402_v1  ;;  %v405_v18 = vsel %vm1427_vm13, %v402_v1, %v400_v55  ;;  %vm1236_vm13 = vmand %vm208_vm14, %vm1162_vm10  ;;  %v817_v1 = vld [vmem:[%s1421_s1 + $0x78] sm:$0xff] }
 0x13b   : > { %v406_v26 = vsel %vm1155_vm8, %v404_v17, 0.0  ;;  %v407_v27 = vsel %vm1162_vm10, %v405_v18, 0.0 }
 0x13c   : > { %v408_v33 = vadd.f32 %v406_v26, %v397_v28  ;;  %v409_v34 = vadd.f32 %v407_v27, %v398_v29 }
 0x141   : > { %v413_v14 = vpop.permute.xlu0 %412 }
 0x142   : > { %v415_v21 = vsel %vm1426_vm15, %v411_v63, %v413_v14  ;;  %v416_v24 = vsel %vm1426_vm15, %v413_v14, %v411_v63  ;;  %vm1428_vm15 = vcmp.lt.s32.totalorder %v1121_v38, 111  ;;  %v816_v63 = vld [vmem:[%s1421_s1 + $0x70] sm:$0xff] }
 0x143   : > { %v417_v31 = vsel %vm1129_vm3, %v415_v21, 0.0  ;;  %v418_v32 = vsel %vm1207_vm11, %v416_v24, 0.0 }
 0x144   : > { %v419_v22 = vadd.f32 %v417_v31, %v408_v33  ;;  %v420_v23 = vadd.f32 %v418_v32, %v409_v34  ;;  %v971_v34 = vmov 839922192  }
 0x149   : > { %v422_v19 = vpop.permute.xlu1 %421 }
 0x14a   : > { %v427_v30 = vsel %vm425_vm2, %v424_v25, %v422_v19  ;;  %v426_v35 = vsel %vm425_vm2, %v422_v19, %v424_v25 }
 0x14b   : > { %v429_v36 = vsel %vm208_vm14, %v427_v30, 0.0  ;;  %v430_v42 = vadd.f32 %v426_v35, %v419_v22  ;;  %v452_v35 = vunpack.c.l.s4 %v971_v34 }
 0x14c   : > { %v431_v43 = vadd.f32 %v429_v36, %v420_v23 }
 0x151   : > { %v435_v39 = vpop.permute.xlu1 %434  ;;  %v433_v40 = vpop.permute.xlu0 %432 }
 0x152   : > { %v437_v44 = vsel %vm1428_vm15, %v433_v40, %v435_v39  ;;  %v438_v46 = vsel %vm1428_vm15, %v435_v39, %v433_v40  ;;  %v453_v39 = vunpack.c.0.s8 %v452_v35  ;;  %vm1448_vm15 = vcmp.ge.s32.totalorder %v1121_v38, 16 }
 0x153   : > { %v439_v47 = vsel %vm1155_vm8, %v437_v44, 0.0  ;;  %v440_v50 = vsel %vm1236_vm13, %v438_v46, 0.0 }
 0x154   : > { %v441_v51 = vadd.f32 %v439_v47, %v430_v42  ;;  %v442_v52 = vadd.f32 %v440_v50, %v431_v43 }
 0x156   : > { %v443_v53 = vmax.f32 %v441_v51, 0.0  ;;  %v444_v55 = vmax.f32 %v442_v52, 0.0 }
 0x158   : > { %820 = vmatpush.msk.msra.mxu2 %vm260_vm0, %v443_v53  ;;  %830 = vmatpush.msk.msra.mxu3 %vm260_vm0, %v444_v55 }
 0x159   : > { %821 = vmatmul.msk.f32.vlgmr.msra.gmra.mxu2 %vm232_vm1, %v811_v56  ;;  %831 = vmatmul.msk.f32.vlgmr.msra.gmra.mxu3 %vm232_vm1, %v811_v56  ;;  %v450_v28 = vpop.permute.xlu1 %449 }
 0x15a   : > { %v454_v52 = vperm.slane %v450_v28, %v453_v39 }
 0x161   : > { %822 = vmatmul.msk.f32.gmra.mxu2 %vm232_vm1, %v812_v58  ;;  %832 = vmatmul.msk.f32.gmra.mxu3 %vm232_vm1, %v812_v58 }
 0x169   : > { %823 = vmatmul.msk.f32.gmra.mxu2 %vm232_vm1, %v813_v59  ;;  %833 = vmatmul.msk.f32.gmra.mxu3 %vm232_vm1, %v813_v59 }
 0x171   : > { %824 = vmatmul.msk.f32.gmra.mxu2 %vm232_vm1, %v814_v61  ;;  %834 = vmatmul.msk.f32.gmra.mxu3 %vm232_vm1, %v814_v61 }
 0x179   : > { %825 = vmatmul.msk.f32.gmra.mxu2 %vm232_vm1, %v815_v62  ;;  %835 = vmatmul.msk.f32.gmra.mxu3 %vm232_vm1, %v815_v62 }
 0x181   : > { %826 = vmatmul.msk.f32.gmra.mxu2 %vm232_vm1, %v816_v63  ;;  %836 = vmatmul.msk.f32.gmra.mxu3 %vm232_vm1, %v816_v63 }
 0x189   : > { %827 = vmatmul.msk.f32.gmra.mxu2 %vm232_vm1, %v817_v1  ;;  %837 = vmatmul.msk.f32.gmra.mxu3 %vm232_vm1, %v817_v1 }
 0x191   : > { %828 = vmatmul.msk.f32.gmra.mxu2 %vm232_vm1, %v818_v2  ;;  %838 = vmatmul.msk.f32.gmra.mxu3 %vm232_vm1, %v818_v2 }
 0x199   : > { %839 = vmatmul.msk.f32.gmra.mxu3 %vm232_vm1, %v819_v3  ;;  %829 = vmatmul.msk.f32.gmra.mxu2 %vm232_vm1, %v819_v3  ;;  %vm1447_vm1 = vcmp.lt.s32.totalorder %v1121_v38, 1  ;;  %v456_v3 = vadd.f32 %v454_v52, %v1045_v0 }
 0x1dc   : > { %v517_v4 = vpop.f32.mrf.mxu2  ;;  %v561_v5 = vpop.f32.mrf.mxu3 }
 0x1dd   : > { %590 = vrot.lane.b32.xlu0 %v561_v5, %s963_s4  ;;  %588 = vrot.lane.b32.xlu2 %v517_v4, %s963_s4  ;;  %s161_s4 = sand.u32 1, %s952_s13  }
 0x1de   : > { %s708_s17 = scalar_lea.sflag [#allocation3], %s161_s4 }
 0x1e4   : > { %v520_v6 = vpop.f32.mrf.mxu2  ;;  %v564_v7 = vpop.f32.mrf.mxu3 }
 0x1e5   : > { %604 = vrot.lane.b32.xlu0 %v564_v7, %s964_s5  ;;  %602 = vrot.lane.b32.xlu2 %v520_v6, %s964_s5  ;;  %s787_s5 = sshll.u32 %s161_s4, 3 }
 0x1ec   : > { %v523_v8 = vpop.f32.mrf.mxu2  ;;  %v567_v9 = vpop.f32.mrf.mxu3 }
 0x1ed   : > { %618 = vrot.lane.b32.xlu2 %v567_v9, %s965_s6  ;;  %616 = vrot.lane.b32.xlu1 %v523_v8, %s965_s6  ;;  %s846_s6 = sshll.u32 %s1013_s16, 3  ;;  %s163_s16 = scalar_lea.vmem [#allocation2], %s787_s5 }
 0x1f4   : > { %v526_v10 = vpop.f32.mrf.mxu2  ;;  %v570_v11 = vpop.f32.mrf.mxu3 }
 0x1f5   : > { %632 = vrot.lane.b32.xlu1 %v570_v11, %s966_s7  ;;  %630 = vrot.lane.b32.xlu0 %v526_v10, %s966_s7 }
 0x1fc   : > { %v529_v12 = vpop.f32.mrf.mxu2  ;;  %v573_v13 = vpop.f32.mrf.mxu3 }
 0x1fd   : > { %v646_v14 = vrot.slane %v573_v13, 4 }
 0x1ff   : > { %v1304_v15 = vsel %vm260_vm0, %v529_v12, %v646_v14 }
 0x204   : > { %v532_v16 = vpop.f32.mrf.mxu2  ;;  %v576_v17 = vpop.f32.mrf.mxu3 }
 0x205   : > { %652 = vrot.lane.b32.xlu0 %v576_v17, %s967_s8  ;;  %650 = vrot.lane.b32.xlu2 %v532_v16, %s967_s8 }
 0x20c   : > { %v535_v18 = vpop.f32.mrf.mxu2  ;;  %v579_v19 = vpop.f32.mrf.mxu3 }
 0x20d   : > { %666 = vrot.lane.b32.xlu2 %v579_v19, %s968_s9  ;;  %664 = vrot.lane.b32.xlu1 %v535_v18, %s968_s9  ;;  %s719_s9 = scalar_lea.hbm %s1423_s3, %s846_s6 }
 0x214   : > { %v538_v21 = vpop.f32.mrf.mxu2  ;;  %v582_v24 = vpop.f32.mrf.mxu3 }
 0x215   : > { %680 = vrot.lane.b32.xlu1 %v582_v24, %s969_s10  ;;  %678 = vrot.lane.b32.xlu0 %v538_v21, %s969_s10  ;;  %s721_s10 = sshll.u32 %s163_s16, 4  ;;  %s722_s10 = int_to_ptr.vmem [resolvable:$true] %s721_s10 }
 0x21c   : > { %v585_v25 = vpop.f32.mrf.mxu3  ;;  %v541_v26 = vpop.f32.mrf.mxu2 }
 0x21d   : > { %694 = vrot.lane.b32.xlu0 %v585_v25, %s970_s11  ;;  %692 = vrot.lane.b32.xlu2 %v541_v26, %s970_s11  ;;  %s723_s11 = sshll.u32 %s719_s9, 4  ;;  %s724_s11 = int_to_ptr.hbm [resolvable:$true] %s723_s11 }
 0x21e   : > { %s912_s19 = sshra.s32 %s724_s11, 4  ;;  %s913_s19 = int_to_ptr.hbm [resolvable:$true] %s912_s19 }
 0x21f   : > { %s914_s20 = scalar_lea.hbm %s913_s19, 8  ;;  %p919_p0 = scmp.lt.s32.totalorder %s913_s19, %s1423_s3 }
 0x220   : > { %p915_p11 = scmp.ne.s32.totalorder %s913_s19, %s914_s20  ;;  %p920_p1 = scmp.lt.s32.totalorder %s918_s26, %s914_s20 }
 0x222   : > { %p916_p12 = pnand %p915_p11, %p1030_p5  ;;  %p921_p2 = por %p920_p1, %p919_p0 }
 0x224   : > { %p917_p13 = pneg %p916_p12 }
 0x226   : > { %p922_p3 = pnand %p921_p2, %p917_p13 }
 0x237   : > { %v589_v27 = vpop.permute.xlu2 %588 }
 0x23f   : > { %v603_v30 = vpop.permute.xlu2 %602 }
 0x247   : > { %v619_v33 = vpop.permute.xlu2 %618 }
 0x24f   : > { %v591_v29 = vpop.permute.xlu0 %590 }
 0x250   : > { %v592_v36 = vsel %vm357_vm4, %v589_v27, %v591_v29  ;;  %v593_v46 = vsel %vm357_vm4, %v591_v29, %v589_v27  ;;  %vm1449_vm4 = vmmov %vm1447_vm1 }
 0x251   : > { %v595_v40 = vsel %vm1134_vm5, %v592_v36, 0.0  ;;  %v594_v56 = vsel %vm1142_vm6, %v593_v46, 0.0  ;;  %vm1450_vm6 = vcmp.lt.s32.totalorder %v1121_v38, 127 }
 0x252   : > { %v598_v47 = vrot.slane %v595_v40, 4 }
 0x254   : > { %v599_v63 = vsel %vm260_vm0, %v594_v56, %v598_v47 }
 0x255   : > { %v601_v6 = vadd.f32 %v599_v63, %v456_v3 }
 0x257   : > { %v605_v32 = vpop.permute.xlu0 %604 }
 0x258   : > { %v606_v44 = vsel %vm368_vm7, %v603_v30, %v605_v32  ;;  %v607_v50 = vsel %vm368_vm7, %v605_v32, %v603_v30  ;;  %vm1452_vm7 = vmmov %vm1450_vm6 }
 0x259   : > { %v612_v55 = vrot.slane %v606_v44, 4  ;;  %v608_v58 = vsel %vm1448_vm15, %v607_v50, 0.0 }
 0x25b   : > { %v613_v4 = vsel %vm260_vm0, %v608_v58, %v612_v55 }
 0x25c   : > { %v615_v10 = vadd.f32 %v613_v4, %v601_v6 }
 0x25f   : > { %v617_v31 = vpop.permute.xlu1 %616  ;;  %v651_v42 = vpop.permute.xlu2 %650 }
 0x260   : > { %v620_v43 = vsel %vm379_vm9, %v617_v31, %v619_v33  ;;  %v621_v1 = vsel %vm379_vm9, %v619_v33, %v617_v31 }
 0x261   : > { %v623_v53 = vsel %vm1162_vm10, %v620_v43, 0.0  ;;  %v622_v7 = vsel %vm1171_vm12, %v621_v1, 0.0 }
 0x262   : > { %v626_v2 = vrot.slane %v623_v53, 4 }
 0x264   : > { %v627_v9 = vsel %vm260_vm0, %v622_v7, %v626_v2 }
 0x265   : > { %v629_v14 = vadd.f32 %v627_v9, %v615_v10 }
 0x267   : > { %v633_v22 = vpop.permute.xlu1 %632  ;;  %v631_v23 = vpop.permute.xlu0 %630 }
 0x268   : > { %v634_v51 = vsel %vm1447_vm1, %v631_v23, %v633_v22  ;;  %v635_v49 = vsel %vm1449_vm4, %v633_v22, %v631_v23  ;;  %v667_v8 = vpop.permute.xlu2 %666 }
 0x269   : > { %v637_v59 = vsel %vm1134_vm5, %v634_v51, 0.0  ;;  %vm1451_vm5 = vcmp.lt.s32.totalorder %v1121_v38, 113  ;;  %v636_v11 = vsel %vm1129_vm3, %v635_v49, 0.0 }
 0x26a   : > { %v640_v5 = vrot.slane %v637_v59, 4  ;;  %vm1453_vm9 = vmmov %vm1451_vm5 }
 0x26c   : > { %v641_v13 = vsel %vm260_vm0, %v636_v11, %v640_v5 }
 0x26d   : > { %v643_v24 = vadd.f32 %v641_v13, %v629_v14 }
 0x26f   : > { %v649_v29 = vadd.f32 %v1304_v15, %v643_v24 }
 0x277   : > { %v653_v61 = vpop.permute.xlu0 %652  ;;  %v693_v30 = vpop.permute.xlu2 %692 }
 0x278   : > { %v655_v48 = vsel %vm1450_vm6, %v653_v61, %v651_v42  ;;  %v654_v18 = vsel %vm1452_vm7, %v651_v42, %v653_v61 }
 0x279   : > { %v657_v12 = vsel %vm1162_vm10, %v655_v48, 0.0  ;;  %v656_v26 = vsel %vm1155_vm8, %v654_v18, 0.0  ;;  %vm1454_vm10 = vcmp.lt.s32.totalorder %v1121_v38, 111 }
 0x27a   : > { %v660_v19 = vrot.slane %v657_v12, 4 }
 0x27c   : > { %v661_v27 = vsel %vm260_vm0, %v656_v26, %v660_v19 }
 0x27d   : > { %v663_v32 = vadd.f32 %v661_v27, %v649_v29 }
 0x27f   : > { %v665_v62 = vpop.permute.xlu1 %664 }
 0x280   : > { %v669_v0 = vsel %vm1451_vm5, %v667_v8, %v665_v62  ;;  %v668_v25 = vsel %vm1453_vm9, %v665_v62, %v667_v8 }
 0x281   : > { %v671_v60 = vsel %vm1207_vm11, %v669_v0, 0.0  ;;  %v670_v41 = vsel %vm1129_vm3, %v668_v25, 0.0  ;;  %vm1455_vm3 = vmmov %vm1454_vm10 }
 0x282   : > { %v674_v20 = vrot.slane %v671_v60, 4 }
 0x284   : > { %v675_v31 = vsel %vm260_vm0, %v670_v41, %v674_v20 }
 0x285   : > { %v677_v36 = vadd.f32 %v675_v31, %v663_v32 }
 0x287   : > { %v681_v16 = vpop.permute.xlu1 %680  ;;  %v679_v17 = vpop.permute.xlu0 %678 }
 0x288   : > { %v683_v21 = vsel %vm425_vm2, %v681_v16, %v679_v17  ;;  %v682_v33 = vsel %vm425_vm2, %v679_v17, %v681_v16 }
 0x289   : > { %v685_v57 = vsel %vm208_vm14, %v683_v21, 0.0 }
 0x28a   : > { %v688_v28 = vrot.slane %v685_v57, 4 }
 0x28c   : > { %v689_v35 = vsel %vm260_vm0, %v682_v33, %v688_v28 }
 0x28d   : > { %v691_v39 = vadd.f32 %v689_v35, %v677_v36 }
 0x28f   : > { %v695_v34 = vpop.permute.xlu0 %694 }
 0x290   : > { %v696_v15 = vsel %vm1454_vm10, %v693_v30, %v695_v34  ;;  %v697_v45 = vsel %vm1455_vm3, %v695_v34, %v693_v30 }
 0x291   : > { %v699_v22 = vsel %vm1236_vm13, %v697_v45, 0.0  ;;  %v698_v40 = vsel %vm1155_vm8, %v696_v15, 0.0 }
 0x292   : > { %v702_v23 = vrot.slane %v699_v22, 4 }
 0x294   : > { %v703_v42 = vsel %vm260_vm0, %v698_v40, %v702_v23 }
 0x295   : > { %v705_v43 = vadd.f32 %v703_v42, %v691_v39 }
 0x297   : > { %706 = vst [vmem:[%s163_s16] sm:$0xff] %v705_v43 }
 0x298   : > { %925 = shalt.err (!%p922_p3)
}
 0x299   : > { %847 = dma.vmem_to_hbm [thread:$0]  (%p1030_p5), %s722_s10, 128, %s724_s11, %s708_s17  }
 0x29a PF: > { %p853_p4 = scmp.ge.s32.totalorder %s960_s15, 2  ;;  %s735_s29 = sand.u32 1, %s948_s12  }
 0x29b   : > { %s736_s30 = scalar_lea.sflag [#allocation3], %s735_s29 }
 0x29c   : > { %p850_p7 = pnand %p853_p4, %p1034_p6 }
 0x29e   : > { %p851_p8 = pneg %p850_p7 }
 0x2a0   : > { %943 = dma.done.wait (%p851_p8), %s736_s30, 128  }
 0x2a1   : > { %945 = vsyncadd (%p851_p8), %s736_s30, 4294967168  ;;  %p13_p9 = scmp.ge.s32.totalorder %s1017_s18, 4   ;;  %s1456_s12 = smov %s952_s13 }
 0x2a2   : > { %s1457_s13 = smov %s956_s14  ;;  %s1458_s14 = smov %s1028_s21 }
 0x2a3   : > { %s1459_s15 = smov %s1017_s18  ;;  %15 = sbr.rel (!%p13_p9) target bundleno = 3 (0x3), region = 69 }
 0x2a8   :  { %742 = vsyncpa [#allocation3], 1 }
 0x2a9   :  { %744 = vsyncpa [#allocation3 + $0x1], 1 }

</bundles_post_ra>
